<compile_context>
chip_gen: v7x
topology: tpu7x:2x2x1
jax: 0.10.0
libtpu: 0.0.40
codegen_flags: <defaults>
</compile_context>

<pallas_src>
import functools

import jax
import jax.numpy as jnp
from jax.experimental import pallas as pl
from jax.experimental.pallas import tpu as pltpu


def _laplacian_kernel(m_ref, x_ref, o_ref, *, W):
    # m_ref: (8, HWp) f32 resident boundary masks (rows 0..3 used).
    # x_ref / o_ref: (nb, HWp); each row is one image flattened row-major.
    x = x_ref[...].astype(jnp.float32)
    hw = x.shape[-1]

    # Neighbour gathers as cyclic lane rolls (XLU slot, otherwise idle here).
    # Wrap-around / padded-lane reads only ever land on masked positions, so
    # the zero-padding semantics of the PyTorch conv are exact.
    left = pltpu.roll(x, 1 % hw, 1)           # x[h, w-1]
    right = pltpu.roll(x, (hw - 1) % hw, 1)   # x[h, w+1]  (shift -1 mod hw)
    up = pltpu.roll(x, W % hw, 1)             # x[h-1, w]
    down = pltpu.roll(x, (hw - W) % hw, 1)    # x[h+1, w]  (shift -W mod hw)

    ml = m_ref[0:1, :]   # has a left neighbour
    mr = m_ref[1:2, :]   # has a right neighbour
    mu = m_ref[2:3, :]   # has an upper neighbour
    md = m_ref[3:4, :]   # has a lower neighbour

    out = (left * ml + right * mr + up * mu + down * md) - 4.0 * x
    o_ref[...] = out.astype(o_ref.dtype)


def _round_up(a, b):
    return ((a + b - 1) // b) * b


_BLOCK_BUDGET_BYTES = 2 * 1024 * 1024   # ~2 MiB input block (4 MiB in+out/step)
_MIN_STEPS_LARGE = 4                    # keep >=4 grid steps for larger tensors


def _pick_block_rows(n_rows, row_bytes):
    """Images per block: multiple of 8, ~2 MiB, and >=4 grid steps when big."""
    total_bytes = n_rows * row_bytes
    cap_budget = max(_BLOCK_BUDGET_BYTES // row_bytes, 1)
    if total_bytes > 2 * _BLOCK_BUDGET_BYTES:
        cap_steps = max(n_rows // _MIN_STEPS_LARGE, 1)   # megacore: >=2 TCs busy
    else:
        cap_steps = n_rows                                # tiny tensor: one step
    nb = min(n_rows, cap_budget, cap_steps)
    nb = max((nb // 8) * 8, 8)   # f32 sublane tile: block rows multiple of 8
    return nb


def laplacian(x):
    """Equivalent of Laplacian.forward: per-channel 3x3 Laplacian, zero pad=1."""
    B, C, H, W = x.shape
    N = B * C
    HW = H * W
    hw_pad = _round_up(HW, 128)          # lane-dense last dim (unmasked stores)
    xr = x.reshape(N, HW)                # contiguous merge: no data movement

    row_bytes = hw_pad * max(x.dtype.itemsize, 4)
    nb = _pick_block_rows(_round_up(N, 8), row_bytes)
    # TODO(synk): huge single images (8 * hw_pad * 4B >> VMEM budget) would want
    # H-strip tiling with a +-1 row halo; not needed for these shapes.
    n_pad = _round_up(N, nb)
    if n_pad != N or hw_pad != HW:
        xr = jnp.pad(xr, ((0, n_pad - N), (0, hw_pad - HW)))

    # Precomputed boundary masks (1.0 = neighbour exists, 0.0 = zero padding).
    # Built once in the wrapper; fetched once by Pallas (constant index_map)
    # and kept resident across every grid step.
    lane = jnp.arange(hw_pad, dtype=jnp.int32)
    w_idx = lane % W
    h_idx = lane // W
    valid = lane < HW
    masks = jnp.stack(
        [
            (w_idx != 0) & valid,        # left neighbour exists
            (w_idx != W - 1) & valid,    # right neighbour exists
            (h_idx != 0) & valid,        # upper neighbour exists
            (h_idx != H - 1) & valid,    # lower neighbour exists
        ]
        + [jnp.zeros_like(valid)] * 4,   # pad to 8 sublanes
        axis=0,
    ).astype(jnp.float32)                # (8, hw_pad)

    grid = (n_pad // nb,)
    kernel = functools.partial(_laplacian_kernel, W=W)

    out = pl.pallas_call(
        kernel,
        out_shape=jax.ShapeDtypeStruct((n_pad, hw_pad), x.dtype),
        grid=grid,
        in_specs=[
            pl.BlockSpec((8, hw_pad), lambda i: (0, 0)),     # resident masks
            pl.BlockSpec((nb, hw_pad), lambda i: (i, 0)),    # image block
        ],
        out_specs=pl.BlockSpec((nb, hw_pad), lambda i: (i, 0)),
        compiler_params=pltpu.CompilerParams(
            dimension_semantics=("parallel",),
            vmem_limit_bytes=48 * 1024 * 1024,
        ),
    )(masks, xr)

    if n_pad != N or hw_pad != HW:
        out = out[:N, :HW]
    return out.reshape(B, C, H, W)


def laplacian_ref(x):
    # Pure-JAX reference (same semantics as the PyTorch module).
    B, C, H, W = x.shape
    xr = x.reshape(B * C, H, W)
    xp = jnp.pad(xr, ((0, 0), (1, 1), (1, 1)))
    out = (xp[:, 0:-2, 1:-1] + xp[:, 2:, 1:-1] +
           xp[:, 1:-1, 0:-2] + xp[:, 1:-1, 2:] -
           4.0 * xp[:, 1:-1, 1:-1])
    return out.reshape(B, C, H, W)


if __name__ == "__main__":
    key = jax.random.PRNGKey(0)
    x = jax.random.normal(key, (2, 4, 16, 16), dtype=jnp.float32)

    y = jax.block_until_ready(laplacian(x))

    y_ref = laplacian_ref(x)
    assert y.shape == x.shape and y.dtype == x.dtype
    assert jnp.allclose(y, y_ref, atol=1e-5, rtol=1e-5), "mismatch vs reference"
    print("KERNEL_OK")
</pallas_src>

<mosaic_0001>
module attributes {stable_mosaic.version = 11 : i64} {
  func.func @_laplacian_kernel(%arg0: i32, %arg1: memref<8x256xf32, #tpu.memory_space<vmem>>, %arg2: memref<8x256xf32, #tpu.memory_space<vmem>>, %arg3: memref<8x256xf32, #tpu.memory_space<vmem>>) attributes {dimension_semantics = [#tpu.dimension_semantics<parallel>], iteration_bounds = array<i64: 1>, scalar_prefetch = 0 : i64, scratch_operands = 0 : i64, tpu.core_type = #tpu.core_type<tc>, window_params = [{pipeline_mode = #tpu.pipeline_mode<synchronous>, transform_indices = @transform_0, window_bounds = array<i64: 8, 256>}, {transform_indices = @transform_1, window_bounds = array<i64: 8, 256>}, {transform_indices = @transform_2, window_bounds = array<i64: 8, 256>}]} {
    %c0 = arith.constant 0 : index
    %c0_0 = arith.constant 0 : index
    %0 = vector.load %arg2[%c0, %c0_0] : memref<8x256xf32, #tpu.memory_space<vmem>>, vector<8x256xf32>
    %c1_i32 = arith.constant 1 : i32
    %1 = tpu.dynamic_rotate %0 by %c1_i32 dim 1 : vector<8x256xf32>, i32 -> vector<8x256xf32>
    %c255_i32 = arith.constant 255 : i32
    %2 = tpu.dynamic_rotate %0 by %c255_i32 dim 1 : vector<8x256xf32>, i32 -> vector<8x256xf32>
    %c16_i32 = arith.constant 16 : i32
    %3 = tpu.dynamic_rotate %0 by %c16_i32 dim 1 : vector<8x256xf32>, i32 -> vector<8x256xf32>
    %c240_i32 = arith.constant 240 : i32
    %4 = tpu.dynamic_rotate %0 by %c240_i32 dim 1 : vector<8x256xf32>, i32 -> vector<8x256xf32>
    %c0_1 = arith.constant 0 : index
    %c0_2 = arith.constant 0 : index
    %5 = vector.load %arg1[%c0_1, %c0_2] : memref<8x256xf32, #tpu.memory_space<vmem>>, vector<1x256xf32>
    %c1 = arith.constant 1 : index
    %c0_3 = arith.constant 0 : index
    %6 = vector.load %arg1[%c1, %c0_3] : memref<8x256xf32, #tpu.memory_space<vmem>>, vector<1x256xf32>
    %c2 = arith.constant 2 : index
    %c0_4 = arith.constant 0 : index
    %7 = vector.load %arg1[%c2, %c0_4] : memref<8x256xf32, #tpu.memory_space<vmem>>, vector<1x256xf32>
    %c3 = arith.constant 3 : index
    %c0_5 = arith.constant 0 : index
    %8 = vector.load %arg1[%c3, %c0_5] : memref<8x256xf32, #tpu.memory_space<vmem>>, vector<1x256xf32>
    %9 = vector.broadcast %5 : vector<1x256xf32> to vector<8x256xf32>
    %10 = arith.mulf %1, %9 : vector<8x256xf32>
    %11 = vector.broadcast %6 : vector<1x256xf32> to vector<8x256xf32>
    %12 = arith.mulf %2, %11 : vector<8x256xf32>
    %13 = arith.addf %10, %12 : vector<8x256xf32>
    %14 = vector.broadcast %7 : vector<1x256xf32> to vector<8x256xf32>
    %15 = arith.mulf %3, %14 : vector<8x256xf32>
    %16 = arith.addf %13, %15 : vector<8x256xf32>
    %17 = vector.broadcast %8 : vector<1x256xf32> to vector<8x256xf32>
    %18 = arith.mulf %4, %17 : vector<8x256xf32>
    %19 = arith.addf %16, %18 : vector<8x256xf32>
    %cst = arith.constant 4.000000e+00 : f32
    %20 = vector.broadcast %cst : f32 to vector<8x256xf32>
    %21 = arith.mulf %20, %0 : vector<8x256xf32>
    %22 = arith.subf %19, %21 : vector<8x256xf32>
    %c0_6 = arith.constant 0 : index
    %c0_7 = arith.constant 0 : index
    %23 = vector.load %arg3[%c0_6, %c0_7] : memref<8x256xf32, #tpu.memory_space<vmem>>, vector<8x256xf32>
    tpu.vector_store %arg3[%c0_6, %c0_7], %22 {strides = array<i32>} : memref<8x256xf32, #tpu.memory_space<vmem>>, vector<8x256xf32>,
    return
  }
  func.func @transform_0(%arg0: i32) -> (i32, i32) {
    %c0_i32 = arith.constant 0 : i32
    %c0_i32_0 = arith.constant 0 : i32
    %c0_i32_1 = arith.constant 0 : i32
    return %c0_i32, %c0_i32_0 : i32, i32
  }
  func.func @transform_1(%arg0: i32) -> (i32, i32) {
    %c0_i32 = arith.constant 0 : i32
    %c0_i32_0 = arith.constant 0 : i32
    return %arg0, %c0_i32 : i32, i32
  }
  func.func @transform_2(%arg0: i32) -> (i32, i32) {
    %c0_i32 = arith.constant 0 : i32
    %c0_i32_0 = arith.constant 0 : i32
    return %arg0, %c0_i32 : i32, i32
  }
}

</mosaic_0001>

<bundles_post_ra>
// kernel: tpu_custom_call.1
= control target key start
LH: loop header
LB: loop body
LE: loop exit
PB: predicated region body
PF: predicated region fallthrough
CT: control target
= control target key end

     0   :  { %7 = vsyncpa [#allocation3], 0  ;;  %s292_s0 = inlined_call_operand.hbm [shape: f32[8,256], index: 0, kind: input, shape index: {}]   ;;  %s293_s1 = inlined_call_operand.hbm [shape: f32[8,256], index: 1, kind: input, shape index: {}]   ;;  %s294_s2 = inlined_call_operand.hbm [shape: f32[8,256], index: 2, kind: output, shape index: {}]  }
   0x1   :  { %8 = vsyncpa [#allocation6], 0 }
   0x2   :  { %9 = vsyncpa [#allocation4], 0  ;;  %s234_s9 = smov [#allocation2]   ;;  %s235_s11 = smov [#allocation5]  }
   0x3   :  { %s16_s10 = sshll.u32 %s234_s9, 4  ;;  %s26_s12 = sshll.u32 %s235_s11, 4  ;;  %s17_s10 = int_to_ptr.vmem [resolvable:$true] %s16_s10  ;;  %s27_s12 = int_to_ptr.vmem [resolvable:$true] %s26_s12 }
   0x4   :  { %s162_s15 = scalar_lea.hbm %s292_s0, 256 }
   0x5   :  { %p163_p0 = scmp.ne.s32.totalorder %s292_s0, %s162_s15  ;;  %p166_p1 = scmp.lt.u32.totalorder %s162_s15, %s292_s0 }
   0x7   :  { %p168_p2 = pnand %p166_p1, %p163_p0 }
   0x9   :  { %171 = shalt.err (!%p168_p2)
}
   0xa   :  { %s172_s20 = scalar_lea.vmem %s17_s10, 256  ;;  %p177_p4 = scmp.lt.s32.totalorder %s17_s10, %s17_s10 }
   0xb   :  { %p173_p3 = scmp.ne.s32.totalorder %s17_s10, %s172_s20  ;;  %p178_p5 = scmp.lt.s32.totalorder %s172_s20, %s172_s20 }
   0xd   :  { %p179_p6 = por %p178_p5, %p177_p4 }
   0xf   :  { %p180_p7 = pnand %p179_p6, %p173_p3 }
  0x11   :  { %183 = shalt.err (!%p180_p7)
}
  0x12   :  { %19 = dma.hbm_to_vmem [thread:$0]  %s292_s0, 256, %s17_s10, [#allocation3]  }
  0x13   :  { %s184_s25 = scalar_lea.hbm %s293_s1, 256 }
  0x14   :  { %p185_p8 = scmp.ne.s32.totalorder %s293_s1, %s184_s25  ;;  %p188_p9 = scmp.lt.u32.totalorder %s184_s25, %s293_s1 }
  0x16   :  { %p190_p10 = pnand %p188_p9, %p185_p8 }
  0x18   :  { %193 = shalt.err (!%p190_p10)
}
  0x19   :  { %s194_s30 = scalar_lea.vmem %s27_s12, 256  ;;  %p199_p12 = scmp.lt.s32.totalorder %s27_s12, %s27_s12 }
  0x1a   :  { %p195_p11 = scmp.ne.s32.totalorder %s27_s12, %s194_s30  ;;  %p200_p13 = scmp.lt.s32.totalorder %s194_s30, %s194_s30 }
  0x1c   :  { %p201_p0 = por %p200_p13, %p199_p12 }
  0x1e   :  { %p202_p1 = pnand %p201_p0, %p195_p11 }
  0x20   :  { %205 = shalt.err (!%p202_p1)
}
  0x21   :  { %29 = dma.hbm_to_vmem [thread:$0]  %s293_s1, 256, %s27_s12, [#allocation6]  }
  0x22   :  { %228 = dma.done.wait [#allocation3], 256  }
  0x23   :  { %229 = vsyncadd [#allocation3], 4294967040 }
  0x24   :  { %230 = dma.done.wait [#allocation6], 256  }
  0x25   :  { %231 = vsyncadd [#allocation6], 4294967040  ;;  %v36_v0 = vld [vmem:[#allocation5] sm:$0xff]  ;;  %s236_s4 = smov 127   ;;  %s237_s5 = smov 1   ;;  %v37_v1 = vld [vmem:[#allocation5 + $0x8] sm:$0xff]  ;;  %v42_v2 = vlaneseq }
  0x26   :  { %47 = vrot.lane.b32.xlu1 %v36_v0, %s236_s4  ;;  %38 = vrot.lane.b32.xlu0 %v36_v0, %s237_s5  ;;  %s238_s6 = smov 16   ;;  %s239_s7 = smov 112   ;;  %v70_v9 = vld [vmem:[#allocation2 + $0x1] ss:$8 sm:$0x3]  ;;  %v133_v43 = vmul.f32 4.0, %v36_v0 }
  0x27   :  { %v77_v3 = vshrl.u32 %v42_v2, 7  ;;  %v43_v4 = vand.u32 127, %v42_v2  ;;  %v68_v10 = vld [vmem:[#allocation2] ss:$8 sm:$0x3]  ;;  %v134_v44 = vmul.f32 4.0, %v37_v1 }
  0x28   :  { %v72_v11 = vld [vmem:[#allocation2 + $0x2] ss:$8 sm:$0x3]  ;;  %v74_v24 = vld [vmem:[#allocation2 + $0x3] ss:$8 sm:$0x3] }
  0x29   :  { %v78_v7 = vsub.s32 0, %v77_v3  ;;  %v82_v8 = vsub.s32 1, %v77_v3  ;;  %vm51_vm0 = vcmp.lt.s32.totalorder %v43_v4, 127  ;;  %vm44_vm1 = vcmp.lt.s32.totalorder %v43_v4, 1  ;;  %s240_s1 = smov [#allocation7]  }
  0x2a   :  { %49 = vrot.lane.b32.xlu1 %v37_v1, %s236_s4  ;;  %40 = vrot.lane.b32.xlu0 %v37_v1, %s237_s5  ;;  %vm58_vm2 = vcmp.lt.s32.totalorder %v43_v4, 16  ;;  %vm65_vm3 = vcmp.lt.s32.totalorder %v43_v4, 112  ;;  %s145_s8 = sshll.u32 %s240_s1, 4  ;;  %s146_s8 = int_to_ptr.vmem [resolvable:$true] %s145_s8 }
  0x2b   :  { %v92_v12 = vrot.slane %v70_v9, %v78_v7  ;;  %v96_v13 = vrot.slane %v70_v9, %v82_v8  ;;  %v79_v15 = vrot.slane %v68_v10, %v78_v7  ;;  %v83_v16 = vrot.slane %v68_v10, %v82_v8  ;;  %s206_s9 = scalar_lea.vmem %s146_s8, 256  ;;  %p211_p3 = scmp.lt.s32.totalorder %s146_s8, %s146_s8 }
  0x2c   :  { %v107_v22 = vrot.slane %v72_v11, %v78_v7  ;;  %v111_v23 = vrot.slane %v72_v11, %v82_v8  ;;  %v122_v35 = vrot.slane %v74_v24, %v78_v7  ;;  %v126_v36 = vrot.slane %v74_v24, %v82_v8  ;;  %p207_p2 = scmp.ne.s32.totalorder %s146_s8, %s206_s9  ;;  %p212_p4 = scmp.lt.s32.totalorder %s206_s9, %s206_s9 }
  0x2e   :  { %56 = vrot.lane.b32.xlu1 %v37_v1, %s238_s6  ;;  %54 = vrot.lane.b32.xlu0 %v36_v0, %s238_s6  ;;  %p213_p5 = por %p212_p4, %p211_p3 }
  0x30   :  { %p214_p6 = pnand %p213_p5, %p207_p2 }
  0x32   :  { %63 = vrot.lane.b32.xlu1 %v37_v1, %s239_s7  ;;  %61 = vrot.lane.b32.xlu0 %v36_v0, %s239_s7 }
  0x98   :  { %v48_v5 = vpop.permute.xlu1 %47  ;;  %v39_v6 = vpop.permute.xlu0 %38 }
  0x9c   :  { %v50_v14 = vpop.permute.xlu1 %49  ;;  %v41_v17 = vpop.permute.xlu0 %40 }
  0x9d   :  { %v52_v18 = vsel %vm51_vm0, %v48_v5, %v50_v14  ;;  %v53_v19 = vsel %vm51_vm0, %v50_v14, %v48_v5  ;;  %v45_v20 = vsel %vm44_vm1, %v39_v6, %v41_v17  ;;  %v46_v21 = vsel %vm44_vm1, %v41_v17, %v39_v6 }
  0x9e   :  { %v99_v25 = vmul.f32 %v92_v12, %v52_v18  ;;  %v100_v26 = vmul.f32 %v96_v13, %v53_v19  ;;  %v86_v27 = vmul.f32 %v79_v15, %v46_v21  ;;  %v87_v28 = vmul.f32 %v83_v16, %v45_v20 }
  0xa0   :  { %v57_v29 = vpop.permute.xlu1 %56  ;;  %v55_v30 = vpop.permute.xlu0 %54  ;;  %v101_v37 = vadd.f32 %v99_v25, %v86_v27  ;;  %v102_v38 = vadd.f32 %v100_v26, %v87_v28 }
  0xa1   :  { %v59_v31 = vsel %vm58_vm2, %v55_v30, %v57_v29  ;;  %v60_v32 = vsel %vm58_vm2, %v57_v29, %v55_v30 }
  0xa2   :  { %v114_v33 = vmul.f32 %v107_v22, %v60_v32  ;;  %v115_v34 = vmul.f32 %v111_v23, %v59_v31 }
  0xa4   :  { %v64_v39 = vpop.permute.xlu1 %63  ;;  %v62_v40 = vpop.permute.xlu0 %61  ;;  %v116_v45 = vadd.f32 %v114_v33, %v101_v37  ;;  %v117_v46 = vadd.f32 %v115_v34, %v102_v38 }
  0xa5   :  { %v66_v41 = vsel %vm65_vm3, %v62_v40, %v64_v39  ;;  %v67_v42 = vsel %vm65_vm3, %v64_v39, %v62_v40 }
  0xa6   :  { %v129_v47 = vmul.f32 %v122_v35, %v66_v41  ;;  %v130_v48 = vmul.f32 %v126_v36, %v67_v42 }
  0xa8   :  { %v131_v49 = vadd.f32 %v129_v47, %v116_v45  ;;  %v132_v50 = vadd.f32 %v130_v48, %v117_v46 }
  0xaa   :  { %v135_v51 = vsub.f32 %v131_v49, %v133_v43  ;;  %v136_v52 = vsub.f32 %v132_v50, %v134_v44 }
  0xac   :  { %137 = vst [vmem:[#allocation7] sm:$0xff] %v135_v51  ;;  %138 = vst [vmem:[#allocation7 + $0x8] sm:$0xff] %v136_v52 }
  0xad   :  { %217 = shalt.err (!%p214_p6)
}
  0xae   :  { %s218_s12 = scalar_lea.hbm %s294_s2, 256 }
  0xaf   :  { %p219_p7 = scmp.ne.s32.totalorder %s294_s2, %s218_s12  ;;  %p222_p8 = scmp.lt.u32.totalorder %s218_s12, %s294_s2 }
  0xb1   :  { %p224_p9 = pnand %p222_p8, %p219_p7 }
  0xb3   :  { %227 = shalt.err (!%p224_p9)
}
  0xb4   :  { %148 = dma.vmem_to_hbm [thread:$0]  %s146_s8, 256, %s294_s2, [#allocation4]  }
  0xb5   :  { %232 = dma.done.wait [#allocation4], 256  }
  0xb6   :  { %233 = vsyncadd [#allocation4], 4294967040 }
  0xb7   :  { %152 = vsyncpa [#allocation3], 1 }
  0xb8   :  { %153 = vsyncpa [#allocation6], 1 }
  0xb9   :  { %154 = vsyncpa [#allocation4], 1 }

</bundles_post_ra>
